<compile_context>
chip_gen: v6e
topology: v6e:2x2x1
jax: 0.10.0
libtpu: 0.0.40
codegen_flags: <defaults>
</compile_context>

<pallas_src>
import math

import jax
import jax.numpy as jnp
from jax.experimental import pallas as pl
from jax.experimental.pallas import tpu as pltpu


def _conv1d_relu(x, w_ref, b_ref, *, K, pad):
    """One 'same' Conv1d (stride 1) + bias + ReLU on a VMEM-resident tile.

    x:      (Cin, L)  f32 value (activation of the previous layer).
    w_ref:  (Cout, K*Cin) stacked weight, W[co, k*Cin + ci] = w_torch[co, ci, k].
    b_ref:  (Cout, 1) bias.
    returns (Cout, L) f32.
    """
    Cin, L = x.shape
    assert w_ref.shape[1] == K * Cin

    # "Same" zero padding along the lane axis, done on values (no ref stores).
    zcols = jnp.zeros((Cin, pad), jnp.float32)
    xp = jnp.concatenate([zcols, x, zcols], axis=1)          # (Cin, L + 2*pad)

    # im2col stack: X_stacked[k*Cin + ci, l] = x[ci, l + k - pad].
    # K is a small static constant (3/5/7) -> fully unrolled static slices.
    xs = jnp.concatenate([xp[:, k:k + L] for k in range(K)], axis=0)  # (K*Cin, L)

    # Single MXU matmul per layer: (Cout, K*Cin) @ (K*Cin, L) -> (Cout, L).
    y = jnp.dot(w_ref[...].astype(jnp.float32), xs,
                preferred_element_type=jnp.float32)
    return jnp.maximum(y + b_ref[...], 0.0)


def _conv_down_kernel(x_ref, w1_ref, b1_ref, w2_ref, b2_ref, w3_ref, b3_ref,
                      pool_ref, feat_ref):
    """Fused Double_conv (3x conv+ReLU) + MaxPool1d(2,2) for one batch element.

    Layout is (C, L): L sits on the 128-lane axis so all stores are lane-dense.
    """
    x = x_ref[0].astype(jnp.float32)                          # (Cin, L)
    y = _conv1d_relu(x, w1_ref, b1_ref, K=3, pad=1)
    y = _conv1d_relu(y, w2_ref, b2_ref, K=5, pad=2)
    y = _conv1d_relu(y, w3_ref, b3_ref, K=7, pad=3)

    # Dropout(p): identity in eval-mode forward.
    # TODO(synk): training-mode dropout (pltpu.prng_random_bits mask) not emitted.
    feat_ref[0] = y.astype(feat_ref.dtype)

    # MaxPool1d(kernel=2, stride=2) fused into the epilogue.  Implemented as
    # two 0/1 selection matmuls so the lane axis is never strided/gathered:
    #   pool[:, j] = max(y[:, 2j], y[:, 2j+1]).
    _, L = y.shape
    Lh = pool_ref.shape[2]
    li = jax.lax.broadcasted_iota(jnp.int32, (L, Lh), 0)
    ji = jax.lax.broadcasted_iota(jnp.int32, (L, Lh), 1)
    sel_even = (li == 2 * ji).astype(jnp.float32)
    sel_odd = (li == 2 * ji + 1).astype(jnp.float32)
    p_even = jnp.dot(y, sel_even, preferred_element_type=jnp.float32)
    p_odd = jnp.dot(y, sel_odd, preferred_element_type=jnp.float32)
    pool_ref[0] = jnp.maximum(p_even, p_odd).astype(pool_ref.dtype)


def conv_down_forward(x_ncl, kernel_params):
    """Forward of Conv_down.  x_ncl: (N, C_in, L) in PyTorch NCL layout.

    kernel_params: ((w1, b1), (w2, b2), (w3, b3)) in stacked kernel layout
    (see pack_params_for_kernel).  Returns (pool_x, x): (N,Cout,L//2), (N,Cout,L).
    """
    (w1, b1), (w2, b2), (w3, b3) = kernel_params
    N, Cin, L = x_ncl.shape
    Cout = w1.shape[0]
    Lh = L // 2

    grid_spec = pltpu.PrefetchScalarGridSpec(
        num_scalar_prefetch=0,
        grid=(N,),
        in_specs=[
            pl.BlockSpec((1, Cin, L), lambda n: (n, 0, 0)),
            # Weights / biases: constant index_map -> fetched once, stay resident.
            pl.BlockSpec(w1.shape, lambda n: (0, 0)),
            pl.BlockSpec(b1.shape, lambda n: (0, 0)),
            pl.BlockSpec(w2.shape, lambda n: (0, 0)),
            pl.BlockSpec(b2.shape, lambda n: (0, 0)),
            pl.BlockSpec(w3.shape, lambda n: (0, 0)),
            pl.BlockSpec(b3.shape, lambda n: (0, 0)),
        ],
        out_specs=(
            pl.BlockSpec((1, Cout, Lh), lambda n: (n, 0, 0)),
            pl.BlockSpec((1, Cout, L), lambda n: (n, 0, 0)),
        ),
    )

    return pl.pallas_call(
        _conv_down_kernel,
        out_shape=(
            jax.ShapeDtypeStruct((N, Cout, Lh), x_ncl.dtype),
            jax.ShapeDtypeStruct((N, Cout, L), x_ncl.dtype),
        ),
        grid_spec=grid_spec,
        compiler_params=pltpu.CompilerParams(
            dimension_semantics=("parallel",),     # batch elements across TCs
            vmem_limit_bytes=32 * 1024 * 1024,
        ),
    )(x_ncl, w1, b1, w2, b2, w3, b3)


def init_conv_down_params(key, in_ch, out_ch, dtype=jnp.float32):
    """PyTorch-layout params for Conv_down(in_ch, out_ch, p).

    Each Conv1d weight is (out_ch, in_ch, K) with PyTorch's default
    uniform(-1/sqrt(fan_in), 1/sqrt(fan_in)) init; bias is (out_ch,).
    """
    layer_defs = [(in_ch, out_ch, 3, 1), (out_ch, out_ch, 5, 2), (out_ch, out_ch, 7, 3)]
    params = []
    for (ci, co, k, pad) in layer_defs:
        key, kw, kb = jax.random.split(key, 3)
        bound = 1.0 / math.sqrt(ci * k)
        w = jax.random.uniform(kw, (co, ci, k), dtype, minval=-bound, maxval=bound)
        b = jax.random.uniform(kb, (co,), dtype, minval=-bound, maxval=bound)
        params.append((w, b, pad))
    return params


def pack_params_for_kernel(torch_params):
    """(out, in, K) PyTorch weights -> (out, K*in) stacked kernel weights.

    Note: this is a permutation (transpose(0, 2, 1)) followed by reshape, NOT a
    plain reshape, so real PyTorch state_dicts map over correctly.
    """
    packed = []
    for (w, b, _pad) in torch_params:
        co, ci, k = w.shape
        w_stacked = jnp.transpose(w, (0, 2, 1)).reshape(co, k * ci)
        packed.append((w_stacked, b.reshape(co, 1)))
    return tuple(packed)


def _reference_forward(x_ncl, torch_params):
    """Pure-JAX/XLA reference of Conv_down.forward (for sanity checking)."""
    y = x_ncl
    for (w, b, pad) in torch_params:
        y = jax.lax.conv_general_dilated(
            y, w, window_strides=(1,), padding=[(pad, pad)],
            dimension_numbers=("NCH", "OIH", "NCH"))
        y = jnp.maximum(y + b[None, :, None], 0.0)
    pool = jnp.maximum(y[:, :, 0::2], y[:, :, 1::2])
    return pool, y


if __name__ == "__main__":
    key = jax.random.PRNGKey(0)
    k_param, k_x = jax.random.split(key)

    N, in_ch, out_ch, L = 2, 4, 8, 16
    p_drop = 0.1                              # Dropout prob; unused in eval forward

    torch_params = init_conv_down_params(k_param, in_ch, out_ch)
    kernel_params = pack_params_for_kernel(torch_params)
    x = jax.random.normal(k_x, (N, in_ch, L), dtype=jnp.float32)

    pool_x, feat_x = conv_down_forward(x, kernel_params)
    jax.block_until_ready((pool_x, feat_x))

    assert pool_x.shape == (N, out_ch, L // 2), pool_x.shape
    assert feat_x.shape == (N, out_ch, L), feat_x.shape

    # Sanity check vs. pure-JAX reference (loose tolerance: MXU f32 matmuls may
    # use reduced-precision passes depending on TPU generation).
    ref_pool, ref_feat = _reference_forward(x, torch_params)
    assert float(jnp.max(jnp.abs(feat_x - ref_feat))) < 5e-2
    assert float(jnp.max(jnp.abs(pool_x - ref_pool))) < 5e-2

    print("KERNEL_OK")
</pallas_src>

<mosaic_0001>
module attributes {stable_mosaic.version = 11 : i64} {
  func.func @_conv_down_kernel(%arg0: i32, %arg1: memref<1x4x16xf32, #tpu.memory_space<vmem>>, %arg2: memref<8x12xf32, #tpu.memory_space<vmem>>, %arg3: memref<8x1xf32, #tpu.memory_space<vmem>>, %arg4: memref<8x40xf32, #tpu.memory_space<vmem>>, %arg5: memref<8x1xf32, #tpu.memory_space<vmem>>, %arg6: memref<8x56xf32, #tpu.memory_space<vmem>>, %arg7: memref<8x1xf32, #tpu.memory_space<vmem>>, %arg8: memref<1x8x8xf32, #tpu.memory_space<vmem>>, %arg9: memref<1x8x16xf32, #tpu.memory_space<vmem>>) attributes {dimension_semantics = [#tpu.dimension_semantics<parallel>], iteration_bounds = array<i64: 2>, scalar_prefetch = 0 : i64, scratch_operands = 0 : i64, tpu.core_type = #tpu.core_type<tc>, window_params = [{transform_indices = @transform_0, window_bounds = array<i64: 1, 4, 16>}, {pipeline_mode = #tpu.pipeline_mode<synchronous>, transform_indices = @transform_1, window_bounds = array<i64: 8, 12>}, {pipeline_mode = #tpu.pipeline_mode<synchronous>, transform_indices = @transform_2, window_bounds = array<i64: 8, 1>}, {pipeline_mode = #tpu.pipeline_mode<synchronous>, transform_indices = @transform_3, window_bounds = array<i64: 8, 40>}, {pipeline_mode = #tpu.pipeline_mode<synchronous>, transform_indices = @transform_4, window_bounds = array<i64: 8, 1>}, {pipeline_mode = #tpu.pipeline_mode<synchronous>, transform_indices = @transform_5, window_bounds = array<i64: 8, 56>}, {pipeline_mode = #tpu.pipeline_mode<synchronous>, transform_indices = @transform_6, window_bounds = array<i64: 8, 1>}, {transform_indices = @transform_7, window_bounds = array<i64: 1, 8, 8>}, {transform_indices = @transform_8, window_bounds = array<i64: 1, 8, 16>}]} {
    %c0 = arith.constant 0 : index
    %c0_0 = arith.constant 0 : index
    %c0_1 = arith.constant 0 : index
    %0 = vector.load %arg1[%c0, %c0_0, %c0_1] : memref<1x4x16xf32, #tpu.memory_space<vmem>>, vector<1x4x16xf32>
    %1 = vector.shape_cast %0 : vector<1x4x16xf32> to vector<4x16xf32>
    %cst = arith.constant 0.000000e+00 : f32
    %2 = vector.broadcast %cst : f32 to vector<4x1xf32>
    %3 = tpu.concatenate %2, %1, %2 in 1 : vector<4x1xf32>, vector<4x16xf32>, vector<4x1xf32> -> vector<4x18xf32>
    %4 = vector.extract_strided_slice %3 {offsets = [0, 0], sizes = [4, 16], strides = [1, 1]} : vector<4x18xf32> to vector<4x16xf32>
    %5 = vector.extract_strided_slice %3 {offsets = [0, 1], sizes = [4, 16], strides = [1, 1]} : vector<4x18xf32> to vector<4x16xf32>
    %6 = vector.extract_strided_slice %3 {offsets = [0, 2], sizes = [4, 16], strides = [1, 1]} : vector<4x18xf32> to vector<4x16xf32>
    %7 = tpu.concatenate %4, %5, %6 in 0 : vector<4x16xf32>, vector<4x16xf32>, vector<4x16xf32> -> vector<12x16xf32>
    %c0_2 = arith.constant 0 : index
    %c0_3 = arith.constant 0 : index
    %8 = vector.load %arg2[%c0_2, %c0_3] : memref<8x12xf32, #tpu.memory_space<vmem>>, vector<8x12xf32>
    %cst_4 = arith.constant dense<0.000000e+00> : vector<8x16xf32>
    %9 = tpu.matmul %8, %7, %cst_4 {dimension_numbers = #tpu.dot_dimension_numbers<[1], [0], [0], [1], [0, 0, 1, 1], [], []>} : vector<8x12xf32>, vector<12x16xf32>, vector<8x16xf32> -> vector<8x16xf32>
    %c0_5 = arith.constant 0 : index
    %c0_6 = arith.constant 0 : index
    %10 = vector.load %arg3[%c0_5, %c0_6] : memref<8x1xf32, #tpu.memory_space<vmem>>, vector<8x1xf32>
    %11 = vector.broadcast %10 : vector<8x1xf32> to vector<8x16xf32>
    %12 = arith.addf %9, %11 : vector<8x16xf32>
    %cst_7 = arith.constant 0.000000e+00 : f32
    %13 = vector.broadcast %cst_7 : f32 to vector<8x16xf32>
    %14 = arith.maximumf %12, %13 : vector<8x16xf32>
    %cst_8 = arith.constant 0.000000e+00 : f32
    %15 = vector.broadcast %cst_8 : f32 to vector<8x2xf32>
    %16 = tpu.concatenate %15, %14, %15 in 1 : vector<8x2xf32>, vector<8x16xf32>, vector<8x2xf32> -> vector<8x20xf32>
    %17 = vector.extract_strided_slice %16 {offsets = [0, 0], sizes = [8, 16], strides = [1, 1]} : vector<8x20xf32> to vector<8x16xf32>
    %18 = vector.extract_strided_slice %16 {offsets = [0, 1], sizes = [8, 16], strides = [1, 1]} : vector<8x20xf32> to vector<8x16xf32>
    %19 = vector.extract_strided_slice %16 {offsets = [0, 2], sizes = [8, 16], strides = [1, 1]} : vector<8x20xf32> to vector<8x16xf32>
    %20 = vector.extract_strided_slice %16 {offsets = [0, 3], sizes = [8, 16], strides = [1, 1]} : vector<8x20xf32> to vector<8x16xf32>
    %21 = vector.extract_strided_slice %16 {offsets = [0, 4], sizes = [8, 16], strides = [1, 1]} : vector<8x20xf32> to vector<8x16xf32>
    %22 = tpu.concatenate %17, %18, %19, %20, %21 in 0 : vector<8x16xf32>, vector<8x16xf32>, vector<8x16xf32>, vector<8x16xf32>, vector<8x16xf32> -> vector<40x16xf32>
    %c0_9 = arith.constant 0 : index
    %c0_10 = arith.constant 0 : index
    %23 = vector.load %arg4[%c0_9, %c0_10] : memref<8x40xf32, #tpu.memory_space<vmem>>, vector<8x40xf32>
    %cst_11 = arith.constant dense<0.000000e+00> : vector<8x16xf32>
    %24 = tpu.matmul %23, %22, %cst_11 {dimension_numbers = #tpu.dot_dimension_numbers<[1], [0], [0], [1], [0, 0, 1, 1], [], []>} : vector<8x40xf32>, vector<40x16xf32>, vector<8x16xf32> -> vector<8x16xf32>
    %c0_12 = arith.constant 0 : index
    %c0_13 = arith.constant 0 : index
    %25 = vector.load %arg5[%c0_12, %c0_13] : memref<8x1xf32, #tpu.memory_space<vmem>>, vector<8x1xf32>
    %26 = vector.broadcast %25 : vector<8x1xf32> to vector<8x16xf32>
    %27 = arith.addf %24, %26 : vector<8x16xf32>
    %cst_14 = arith.constant 0.000000e+00 : f32
    %28 = vector.broadcast %cst_14 : f32 to vector<8x16xf32>
    %29 = arith.maximumf %27, %28 : vector<8x16xf32>
    %cst_15 = arith.constant 0.000000e+00 : f32
    %30 = vector.broadcast %cst_15 : f32 to vector<8x3xf32>
    %31 = tpu.concatenate %30, %29, %30 in 1 : vector<8x3xf32>, vector<8x16xf32>, vector<8x3xf32> -> vector<8x22xf32>
    %32 = vector.extract_strided_slice %31 {offsets = [0, 0], sizes = [8, 16], strides = [1, 1]} : vector<8x22xf32> to vector<8x16xf32>
    %33 = vector.extract_strided_slice %31 {offsets = [0, 1], sizes = [8, 16], strides = [1, 1]} : vector<8x22xf32> to vector<8x16xf32>
    %34 = vector.extract_strided_slice %31 {offsets = [0, 2], sizes = [8, 16], strides = [1, 1]} : vector<8x22xf32> to vector<8x16xf32>
    %35 = vector.extract_strided_slice %31 {offsets = [0, 3], sizes = [8, 16], strides = [1, 1]} : vector<8x22xf32> to vector<8x16xf32>
    %36 = vector.extract_strided_slice %31 {offsets = [0, 4], sizes = [8, 16], strides = [1, 1]} : vector<8x22xf32> to vector<8x16xf32>
    %37 = vector.extract_strided_slice %31 {offsets = [0, 5], sizes = [8, 16], strides = [1, 1]} : vector<8x22xf32> to vector<8x16xf32>
    %38 = vector.extract_strided_slice %31 {offsets = [0, 6], sizes = [8, 16], strides = [1, 1]} : vector<8x22xf32> to vector<8x16xf32>
    %39 = tpu.concatenate %32, %33, %34, %35, %36, %37, %38 in 0 : vector<8x16xf32>, vector<8x16xf32>, vector<8x16xf32>, vector<8x16xf32>, vector<8x16xf32>, vector<8x16xf32>, vector<8x16xf32> -> vector<56x16xf32>
    %c0_16 = arith.constant 0 : index
    %c0_17 = arith.constant 0 : index
    %40 = vector.load %arg6[%c0_16, %c0_17] : memref<8x56xf32, #tpu.memory_space<vmem>>, vector<8x56xf32>
    %cst_18 = arith.constant dense<0.000000e+00> : vector<8x16xf32>
    %41 = tpu.matmul %40, %39, %cst_18 {dimension_numbers = #tpu.dot_dimension_numbers<[1], [0], [0], [1], [0, 0, 1, 1], [], []>} : vector<8x56xf32>, vector<56x16xf32>, vector<8x16xf32> -> vector<8x16xf32>
    %c0_19 = arith.constant 0 : index
    %c0_20 = arith.constant 0 : index
    %42 = vector.load %arg7[%c0_19, %c0_20] : memref<8x1xf32, #tpu.memory_space<vmem>>, vector<8x1xf32>
    %43 = vector.broadcast %42 : vector<8x1xf32> to vector<8x16xf32>
    %44 = arith.addf %41, %43 : vector<8x16xf32>
    %cst_21 = arith.constant 0.000000e+00 : f32
    %45 = vector.broadcast %cst_21 : f32 to vector<8x16xf32>
    %46 = arith.maximumf %44, %45 : vector<8x16xf32>
    %c0_22 = arith.constant 0 : index
    %c0_23 = arith.constant 0 : index
    %c0_24 = arith.constant 0 : index
    %47 = vector.load %arg9[%c0_22, %c0_23, %c0_24] : memref<1x8x16xf32, #tpu.memory_space<vmem>>, vector<1x8x16xf32>
    %48 = vector.shape_cast %47 : vector<1x8x16xf32> to vector<8x16xf32>
    %49 = vector.shape_cast %46 : vector<8x16xf32> to vector<1x8x16xf32>
    tpu.vector_store %arg9[%c0_22, %c0_23, %c0_24], %49 {strides = array<i32>} : memref<1x8x16xf32, #tpu.memory_space<vmem>>, vector<1x8x16xf32>,
    %50 = tpu.iota {dimensions = array<i32: 0>} : vector<16x8xi32>
    %51 = tpu.iota {dimensions = array<i32: 1>} : vector<16x8xi32>
    %c2_i32 = arith.constant 2 : i32
    %52 = vector.broadcast %c2_i32 : i32 to vector<16x8xi32>
    %53 = arith.muli %52, %51 : vector<16x8xi32>
    %54 = arith.cmpi eq, %50, %53 : vector<16x8xi32>
    %55 = arith.extui %54 : vector<16x8xi1> to vector<16x8xi32>
    %56 = arith.sitofp %55 : vector<16x8xi32> to vector<16x8xf32>
    %c2_i32_25 = arith.constant 2 : i32
    %57 = vector.broadcast %c2_i32_25 : i32 to vector<16x8xi32>
    %58 = arith.muli %57, %51 : vector<16x8xi32>
    %c1_i32 = arith.constant 1 : i32
    %59 = vector.broadcast %c1_i32 : i32 to vector<16x8xi32>
    %60 = arith.addi %58, %59 : vector<16x8xi32>
    %61 = arith.cmpi eq, %50, %60 : vector<16x8xi32>
    %62 = arith.extui %61 : vector<16x8xi1> to vector<16x8xi32>
    %63 = arith.sitofp %62 : vector<16x8xi32> to vector<16x8xf32>
    %cst_26 = arith.constant dense<0.000000e+00> : vector<8x8xf32>
    %64 = tpu.matmul %46, %56, %cst_26 {dimension_numbers = #tpu.dot_dimension_numbers<[1], [0], [0], [1], [0, 0, 1, 1], [], []>} : vector<8x16xf32>, vector<16x8xf32>, vector<8x8xf32> -> vector<8x8xf32>
    %cst_27 = arith.constant dense<0.000000e+00> : vector<8x8xf32>
    %65 = tpu.matmul %46, %63, %cst_27 {dimension_numbers = #tpu.dot_dimension_numbers<[1], [0], [0], [1], [0, 0, 1, 1], [], []>} : vector<8x16xf32>, vector<16x8xf32>, vector<8x8xf32> -> vector<8x8xf32>
    %66 = arith.maximumf %64, %65 : vector<8x8xf32>
    %c0_28 = arith.constant 0 : index
    %c0_29 = arith.constant 0 : index
    %c0_30 = arith.constant 0 : index
    %67 = vector.load %arg8[%c0_28, %c0_29, %c0_30] : memref<1x8x8xf32, #tpu.memory_space<vmem>>, vector<1x8x8xf32>
    %68 = vector.shape_cast %67 : vector<1x8x8xf32> to vector<8x8xf32>
    %69 = vector.shape_cast %66 : vector<8x8xf32> to vector<1x8x8xf32>
    tpu.vector_store %arg8[%c0_28, %c0_29, %c0_30], %69 {strides = array<i32>} : memref<1x8x8xf32, #tpu.memory_space<vmem>>, vector<1x8x8xf32>,
    return
  }
  func.func @transform_0(%arg0: i32) -> (i32, i32, i32) {
    %c0_i32 = arith.constant 0 : i32
    %c0_i32_0 = arith.constant 0 : i32
    %c0_i32_1 = arith.constant 0 : i32
    return %arg0, %c0_i32, %c0_i32_0 : i32, i32, i32
  }
  func.func @transform_1(%arg0: i32) -> (i32, i32) {
    %c0_i32 = arith.constant 0 : i32
    %c0_i32_0 = arith.constant 0 : i32
    %c0_i32_1 = arith.constant 0 : i32
    return %c0_i32, %c0_i32_0 : i32, i32
  }
  func.func @transform_2(%arg0: i32) -> (i32, i32) {
    %c0_i32 = arith.constant 0 : i32
    %c0_i32_0 = arith.constant 0 : i32
    %c0_i32_1 = arith.constant 0 : i32
    return %c0_i32, %c0_i32_0 : i32, i32
  }
  func.func @transform_3(%arg0: i32) -> (i32, i32) {
    %c0_i32 = arith.constant 0 : i32
    %c0_i32_0 = arith.constant 0 : i32
    %c0_i32_1 = arith.constant 0 : i32
    return %c0_i32, %c0_i32_0 : i32, i32
  }
  func.func @transform_4(%arg0: i32) -> (i32, i32) {
    %c0_i32 = arith.constant 0 : i32
    %c0_i32_0 = arith.constant 0 : i32
    %c0_i32_1 = arith.constant 0 : i32
    return %c0_i32, %c0_i32_0 : i32, i32
  }
  func.func @transform_5(%arg0: i32) -> (i32, i32) {
    %c0_i32 = arith.constant 0 : i32
    %c0_i32_0 = arith.constant 0 : i32
    %c0_i32_1 = arith.constant 0 : i32
    return %c0_i32, %c0_i32_0 : i32, i32
  }
  func.func @transform_6(%arg0: i32) -> (i32, i32) {
    %c0_i32 = arith.constant 0 : i32
    %c0_i32_0 = arith.constant 0 : i32
    %c0_i32_1 = arith.constant 0 : i32
    return %c0_i32, %c0_i32_0 : i32, i32
  }
  func.func @transform_7(%arg0: i32) -> (i32, i32, i32) {
    %c0_i32 = arith.constant 0 : i32
    %c0_i32_0 = arith.constant 0 : i32
    %c0_i32_1 = arith.constant 0 : i32
    return %arg0, %c0_i32, %c0_i32_0 : i32, i32, i32
  }
  func.func @transform_8(%arg0: i32) -> (i32, i32, i32) {
    %c0_i32 = arith.constant 0 : i32
    %c0_i32_0 = arith.constant 0 : i32
    %c0_i32_1 = arith.constant 0 : i32
    return %arg0, %c0_i32, %c0_i32_0 : i32, i32, i32
  }
}

</mosaic_0001>

<bundles_post_ra>
// kernel: tpu_custom_call.1
= control target key start
LH: loop header
LB: loop body
LE: loop exit
PB: predicated region body
PF: predicated region fallthrough
CT: control target
= control target key end

     0   :  { %s1411_s0 = inlined_call_operand.vmem [shape: f32[2,4,16], index: 0, kind: input, shape index: {}]   ;;  %s1412_s1 = inlined_call_operand.vmem [shape: f32[8,12], index: 1, kind: input, shape index: {}]   ;;  %s1413_s2 = inlined_call_operand.vmem [shape: f32[8,1], index: 2, kind: input, shape index: {}]   ;;  %s1414_s3 = inlined_call_operand.vmem [shape: f32[8,40], index: 3, kind: input, shape index: {}]   ;;  %s1415_s4 = inlined_call_operand.vmem [shape: f32[8,1], index: 4, kind: input, shape index: {}]   ;;  %s1416_s5 = inlined_call_operand.vmem [shape: f32[8,56], index: 5, kind: input, shape index: {}]   ;;  %s1417_s6 = inlined_call_operand.vmem [shape: f32[8,1], index: 6, kind: input, shape index: {}]   ;;  %s1418_s7 = inlined_call_operand.hbm [shape: f32[2,8,8], index: 7, kind: output, shape index: {0}]   ;;  %s1419_s8 = inlined_call_operand.hbm [shape: f32[2,8,16], index: 8, kind: output, shape index: {1}]  }
   0x1   :  { %1422 = sst [smem:[#allocation8_spill]] %s1411_s0 }
   0x2   :  { %14 = vsyncpa [#allocation3], 0 }
   0x3   :  { %16 = vsyncpa [#allocation3 + $0x1], 0 }
   0x4   :  { %17 = vsyncpa [#allocation5], 0 }
   0x5   :  { %19 = vsyncpa [#allocation5 + $0x1], 0  ;;  %s1230_s27 = smov 0   ;;  %s1232_s28 = smov 0  }
   0x6   :  { %s1234_s29 = smov 0   ;;  %s1236_s30 = smov 0  }
   0x7 LB: > { %s1251_s9 = sadd.s32 4294967295, %s1168_s30   ;;  %s916_s10 = sadd.s32 4294967294, %s1168_s30   ;;  %s1168_s30 = sphi %s1236_s30, %s1431_s30   ;;  %s1164_s29 = sphi %s1234_s29, %s1430_s29   ;;  %s1160_s28 = sphi %s1232_s28, %s1429_s28   ;;  %s1156_s27 = sphi %s1230_s27, %s1428_s27  }
   0x8   : > { %s1255_s11 = sadd.s32 1, %s1168_s30   ;;  %s184_s12 = sadd.s32 1, %s1164_s29 }
   0x9   : > { %s181_s13 = ssub.s32 %s1168_s30, %s1255_s11  ;;  %p194_p0 = scmp.ne.s32.totalorder %s1164_s29, %s1160_s28 }
   0xa   : > { %p182_p1 = scmp.eq.s32.totalorder %s181_s13, 0  ;;  %p195_p2 = scmp.eq.s32.totalorder %s1251_s9, 1 }
   0xb   : > { %p200_p3 = scmp.ne.s32.totalorder %s1160_s28, %s1156_s27  ;;  %p201_p4 = scmp.eq.s32.totalorder %s916_s10, 1 }
   0xc   : > { %s1266_s14 = scalar_select %p182_p1, %s1164_s29, %s184_s12  }
   0xd   : > { %p1268_p5 = por %p195_p2, %p194_p0  ;;  %p1272_p6 = por %p201_p4, %p200_p3 }
   0xe   : > { %p919_p7 = scmp.ge.s32.totalorder %s1168_s30, 1  ;;  %p270_p8 = scmp.lt.s32.totalorder %s1168_s30, 3 }
  0x10   : > { %p271_p9 = pnand %p919_p7, %p270_p8 }
  0x11   : > { %p308_p10 = scmp.lt.s32.totalorder (!%p271_p9), %s1251_s9, 1  ;;  %s1425_s0 = sld [smem:[#allocation8_spill]] (!%p271_p9) }
  0x12   : > { %274 = sbr.rel (%p271_p9) target bundleno = 1553 (0x611), region = 48  ;;  %s1171_s22 = smov (!%p271_p9), 1  }
  0x13   : > { %s1174_s23 = smov (!%p271_p9), 126   ;;  %s1175_s24 = smov (!%p271_p9), 127  }
  0x14   : > { %s1176_s13 = smov (!%p271_p9), 2   ;;  %s1179_s25 = smov (!%p271_p9), 3  }
  0x15   : > { %s1180_s26 = smov (!%p271_p9), 123   ;;  %s1181_s10 = smov (!%p271_p9), 122  }
  0x16   : > { %s1421_s20 = sshll.u32 (!%p271_p9), %s1251_s9, 7 }
  0x17   : > { %v1170_v0 = vmov 0.0   ;;  %s309_s17 = scalar_select %p308_p10, %s1251_s9, 1  ;;  %vm1172_vm0 = vmmov 0   ;;  %v1173_v2 = vmov 0   ;;  %vm317_vm1 = vcmask 7168   ;;  %v331_v7 = vld [vmem:[%s1413_s2] sm:$0xff] }
  0x18   : > { %968 = vmatprep.subr.mxu0 %v1170_v0  ;;  %975 = vmatprep.subr.mxu1 %v1170_v0  ;;  %vm319_vm2 = vcmask 138240   ;;  %vm328_vm3 = vcmask 1043456   ;;  %v330_v10 = vld [vmem:[%s1412_s1] sm:$0xff]  ;;  %vm337_vm4 = vcmask 97280   ;;  %vm418_vm5 = vcmask 15360  }
  0x19   : > { %s922_s18 = sshll.u32 %s309_s17, 2  ;;  %972 = vmatprep.mubr.msk.f32.mxu0 %vm1172_vm0, %v1170_v0  ;;  %985 = vmatprep.mubr.msk.f32.mxu1 %vm1172_vm0, %v1170_v0  ;;  %vm420_vm6 = vcmask 146432   ;;  %s1177_s17 = smov 125   ;;  %v436_v20 = vld [vmem:[%s1415_s4] sm:$0xff]  ;;  %vm442_vm7 = vcmask 326656   ;;  %vm521_vm8 = vcmask 23552   ;;  %v628_v42 = vlaneseq }
  0x1a   : > { %s311_s21 = scalar_lea.vmem %s1425_s0, %s922_s18  ;;  %1076 = vset.pattern.permute.xlu1 %v1173_v2  ;;  %1077 = vset.pattern.permute.xlu0 %v1173_v2  ;;  %s1178_s18 = smov 124   ;;  %v435_v25 = vld [vmem:[%s1414_s3] sm:$0xff]  ;;  %vm523_vm9 = vcmask 154624   ;;  %vm551_vm10 = vcmask 457728   ;;  %v1182_v47 = vmov 1.0   ;;  %vm626_vm15 = vcmask 130048  }
  0x1b   : > { %v312_v1 = vld [vmem:[%s311_s21] sm:$0xf]  ;;  %v629_v43 = vshrl.u32 %v628_v42, 7  ;;  %v632_v44 = vand.u32 127, %v628_v42 }
  0x1c   : > { %314 = vrot.lane.b32.xlu0 %v312_v1, %s1171_s22  ;;  %v545_v34 = vld [vmem:[%s1417_s6] sm:$0xff] }
  0x1d   : > { %v544_v41 = vld [vmem:[%s1416_s5] sm:$0xff]  ;;  %v630_v45 = vadd.s32 8, %v629_v43  ;;  %v633_v46 = vmul.u32 2, %v632_v44 }
  0x1f   : > { %vm635_vm11 = vcmp.eq.s32.totalorder %v630_v45, %v633_v46  ;;  %vm634_vm12 = vcmp.eq.s32.totalorder %v629_v43, %v633_v46  ;;  %v640_v48 = vadd.s32 1, %v633_v46 }
  0x21   : > { %vm642_vm13 = vcmp.eq.s32.totalorder %v630_v45, %v640_v48  ;;  %vm641_vm14 = vcmp.eq.s32.totalorder %v629_v43, %v640_v48 }
  0x8e   : > { %v315_v3 = vpop.permute.xlu0 %314 }
  0x8f   : > { %v318_v4 = vsel %vm317_vm1, 0.0, %v315_v3 }
  0x90   : > { %v320_v5 = vsel %vm319_vm2, %v318_v4, 0.0 }
  0x91   : > { %326 = vrot.lane.b32.xlu0 %v320_v5, %s1174_s23  ;;  %v322_v6 = vrot.slane %v320_v5, 4 }
  0x93   : > { %323 = vrot.lane.b32.xlu1 %v322_v6, %s1175_s24 }
  0x97   : > { %334 = vperm.xlu1 %1076, %v331_v7  }
 0x103   : > { %v327_v8 = vpop.permute.xlu0 %326 }
 0x104   : > { %969 = vmatpush3.msk.msra.mxu0 %vm328_vm3, %v327_v8 }
 0x105   : > { %v324_v9 = vpop.permute.xlu1 %323  ;;  %970 = vmatprep.subr.mxu0 %v1170_v0 }
 0x106   : > { %v329_v11 = vsel %vm328_vm3, %v320_v5, %v324_v9 }
 0x107   : > { %971 = vmatpush3.msra.mxu0 %v329_v11 }
 0x108   : > { %973 = vmatmul.mubr.msk.f32.vlgmr.msra.gmra.mxu0 %vm337_vm4, %v330_v10  ;;  %988 = vmatprep.subr.mxu0 %v1170_v0 }
 0x109   : > { %1002 = vmatprep.mubr.msk.f32.mxu0 %vm1172_vm0, %v1170_v0 }
 0x112   : > { %v335_v12 = vpop.permute.xlu1 %334 }
 0x1c8   : > { %v409_v13 = vpop.f32.mrf.mxu0 }
 0x1c9   : > { %v410_v14 = vadd.f32 %v409_v13, %v335_v12 }
 0x1ca   : > { %v974_v15 = vpop.f32.mrf.mxu0 }
 0x1cb   : > { %v413_v16 = vmax.f32 %v410_v14, 0.0 }
 0x1cd   : > { %415 = vrot.lane.b32.xlu0 %v413_v16, %s1176_s13  ;;  %s1183_s13 = smov [#allocation4]  }
 0x23f   : > { %v416_v17 = vpop.permute.xlu0 %415 }
 0x240   : > { %v419_v18 = vsel %vm418_vm5, 0.0, %v416_v17 }
 0x241   : > { %v421_v19 = vsel %vm420_vm6, %v419_v18, 0.0 }
 0x242   : > { %429 = vrot.lane.b32.xlu0 %v421_v19, %s1177_s17  ;;  %432 = vrot.lane.b32.xlu1 %v421_v19, %s1178_s18 }
 0x246   : > { %423 = vrot.lane.b32.xlu0 %v421_v19, %s1175_s24  ;;  %426 = vrot.lane.b32.xlu1 %v421_v19, %s1174_s23 }
 0x24a   : > { %439 = vperm.xlu1 %1076, %v436_v20  }
 0x2b4   : > { %v430_v21 = vpop.permute.xlu0 %429  ;;  %v433_v22 = vpop.permute.xlu1 %432 }
 0x2b5   : > { %976 = vmatpush3.msra.mxu1 %v433_v22 }
 0x2b6   : > { %977 = vmatprep.subr.mxu1 %v1170_v0 }
 0x2b7   : > { %978 = vmatpush3.msra.mxu1 %v430_v21 }
 0x2b8   : > { %979 = vmatprep.subr.mxu1 %v1170_v0  ;;  %v427_v23 = vpop.permute.xlu1 %426  ;;  %v424_v24 = vpop.permute.xlu0 %423 }
 0x2b9   : > { %980 = vmatpush3.msra.mxu1 %v427_v23 }
 0x2ba   : > { %981 = vmatprep.subr.mxu1 %v1170_v0 }
 0x2bb   : > { %982 = vmatpush3.msra.mxu1 %v424_v24 }
 0x2bc   : > { %983 = vmatprep.subr.mxu1 %v1170_v0 }
 0x2bd   : > { %984 = vmatpush3.msk.msra.mxu1 %vm420_vm6, %v419_v18 }
 0x2be   : > { %986 = vmatmul.mubr.msk.f32.vlgmr.msra.gmra.mxu1 %vm442_vm7, %v435_v25  ;;  %1005 = vmatprep.subr.mxu1 %v1170_v0 }
 0x2bf   : > { %1009 = vmatprep.mubr.msk.f32.mxu1 %vm1172_vm0, %v1170_v0  ;;  %1006 = vmatpush3.msk.msra.mxu1 %vm635_vm11, %v1182_v47 }
 0x2c0   : > { %1007 = vmatprep.subr.mxu1 %v1170_v0 }
 0x2c1   : > { %1008 = vmatpush3.msk.msra.mxu1 %vm634_vm12, %v1182_v47 }
 0x2c2   : > { %1012 = vmatprep.subr.mxu1 %v1170_v0 }
 0x2c5   : > { %v440_v26 = vpop.permute.xlu1 %439 }
 0x37e   : > { %v512_v27 = vpop.f32.mrf.mxu1 }
 0x37f   : > { %v513_v28 = vadd.f32 %v512_v27, %v440_v26 }
 0x380   : > { %v987_v29 = vpop.f32.mrf.mxu1 }
 0x381   : > { %v516_v30 = vmax.f32 %v513_v28, 0.0 }
 0x383   : > { %518 = vrot.lane.b32.xlu0 %v516_v30, %s1179_s25  ;;  %s823_s25 = scalar_lea.hbm %s1419_s8, %s1421_s20 }
 0x3f5   : > { %v519_v31 = vpop.permute.xlu0 %518 }
 0x3f6   : > { %v522_v32 = vsel %vm521_vm8, 0.0, %v519_v31 }
 0x3f7   : > { %v524_v33 = vsel %vm523_vm9, %v522_v32, 0.0 }
 0x3f8   : > { %538 = vrot.lane.b32.xlu0 %v524_v33, %s1180_s26  ;;  %541 = vrot.lane.b32.xlu1 %v524_v33, %s1181_s10 }
 0x3fc   : > { %532 = vrot.lane.b32.xlu0 %v524_v33, %s1177_s17  ;;  %535 = vrot.lane.b32.xlu1 %v524_v33, %s1178_s18  ;;  %s1341_s17 = sand.u32 1, %s1160_s28  }
 0x3fd   : > { %s1420_s18 = sshll.u32 %s1341_s17, 3  ;;  %s799_s10 = scalar_lea.sflag [#allocation5], %s1341_s17 }
 0x3fe   : > { %s307_s19 = scalar_lea.vmem [#allocation4], %s1420_s18 }
 0x3ff   : > { %s825_s26 = sshll.u32 %s307_s19, 4  ;;  %s826_s26 = int_to_ptr.vmem [resolvable:$true] %s825_s26 }
 0x400   : > { %526 = vrot.lane.b32.xlu0 %v524_v33, %s1175_s24  ;;  %529 = vrot.lane.b32.xlu1 %v524_v33, %s1174_s23  ;;  %s1078_s12 = scalar_lea.vmem %s826_s26, 128  ;;  %s1082_s23 = sshll.u32 %s1183_s13, 4  ;;  %s1083_s23 = int_to_ptr.vmem [resolvable:$false] %s1082_s23 }
 0x401   : > { %p1079_p11 = scmp.ne.s32.totalorder %s826_s26, %s1078_s12  ;;  %s1084_s24 = scalar_lea.vmem %s1083_s23, 256 }
 0x402   : > { %p1085_p0 = scmp.lt.s32.totalorder %s826_s26, %s1083_s23  ;;  %p1086_p1 = scmp.lt.s32.totalorder %s1084_s24, %s1078_s12 }
 0x403   : > { %p1080_p12 = pnand %p1079_p11, %p1268_p5 }
 0x404   : > { %548 = vperm.xlu1 %1076, %v545_v34   ;;  %p1087_p2 = por %p1086_p1, %p1085_p0 }
 0x405   : > { %p1081_p13 = pneg %p1080_p12 }
 0x407   : > { %p1088_p3 = pnand %p1087_p2, %p1081_p13 }
 0x46a   : > { %v539_v35 = vpop.permute.xlu0 %538  ;;  %v542_v36 = vpop.permute.xlu1 %541 }
 0x46b   : > { %989 = vmatpush3.msra.mxu0 %v542_v36 }
 0x46c   : > { %990 = vmatprep.subr.mxu0 %v1170_v0 }
 0x46d   : > { %991 = vmatpush3.msra.mxu0 %v539_v35 }
 0x46e   : > { %v533_v37 = vpop.permute.xlu0 %532  ;;  %992 = vmatprep.subr.mxu0 %v1170_v0  ;;  %v536_v38 = vpop.permute.xlu1 %535 }
 0x46f   : > { %993 = vmatpush3.msra.mxu0 %v536_v38 }
 0x470   : > { %994 = vmatprep.subr.mxu0 %v1170_v0 }
 0x471   : > { %995 = vmatpush3.msra.mxu0 %v533_v37 }
 0x472   : > { %996 = vmatprep.subr.mxu0 %v1170_v0  ;;  %v530_v39 = vpop.permute.xlu1 %529  ;;  %v527_v40 = vpop.permute.xlu0 %526 }
 0x473   : > { %997 = vmatpush3.msra.mxu0 %v530_v39 }
 0x474   : > { %998 = vmatprep.subr.mxu0 %v1170_v0 }
 0x475   : > { %999 = vmatpush3.msra.mxu0 %v527_v40 }
 0x476   : > { %1000 = vmatprep.subr.mxu0 %v1170_v0 }
 0x477   : > { %1001 = vmatpush3.msk.msra.mxu0 %vm523_vm9, %v522_v32 }
 0x478   : > { %1003 = vmatmul.mubr.msk.f32.vlgmr.msra.gmra.mxu0 %vm551_vm10, %v544_v41 }
 0x47f   : > { %v549_v49 = vpop.permute.xlu1 %548 }
 0x538   : > { %v621_v50 = vpop.f32.mrf.mxu0 }
 0x539   : > { %v622_v51 = vadd.f32 %v621_v50, %v549_v49 }
 0x53a   : > { %v1004_v52 = vpop.f32.mrf.mxu0 }
 0x53b   : > { %v625_v53 = vmax.f32 %v622_v51, 0.0 }
 0x53d   : > { %1010 = vmatmul.mubr.msk.f32.vlgmr.msra.gmra.mxu1 %vm626_vm15, %v625_v53  ;;  %627 = vst.msk [vmem:[%s307_s19] sm:$0xff] %vm626_vm15, %v625_v53 }
 0x53e   : > { %1013 = vmatpush3.msk.msra.mxu1 %vm642_vm13, %v1182_v47  ;;  %1016 = vmatprep.mubr.msk.f32.mxu1 %vm1172_vm0, %v1170_v0 }
 0x53f   : > { %1014 = vmatprep.subr.mxu1 %v1170_v0 }
 0x540   : > { %1015 = vmatpush3.msk.msra.mxu1 %vm641_vm14, %v1182_v47 }
 0x541   : > { %1017 = vmatmul.mubr.msk.f32.vlgmr.msra.gmra.mxu1 %vm626_vm15, %v625_v53 }
 0x542   : > { %1091 = shalt.err (!%p1088_p3)
}
 0x543   : > { %s1092_s18 = scalar_lea.hbm %s823_s25, 128  ;;  %s1096_s22 = scalar_lea.hbm %s1419_s8, 256 }
 0x544   : > { %p1093_p4 = scmp.ne.s32.totalorder %s823_s25, %s1092_s18  ;;  %p1097_p9 = scmp.lt.s32.totalorder %s823_s25, %s1419_s8 }
 0x545   : > { %p1098_p10 = scmp.lt.s32.totalorder %s1096_s22, %s1092_s18 }
 0x546   : > { %p1094_p7 = pnand %p1093_p4, %p1268_p5 }
 0x547   : > { %p1099_p11 = por %p1098_p10, %p1097_p9 }
 0x548   : > { %p1095_p8 = pneg %p1094_p7 }
 0x54a   : > { %p1100_p12 = pnand %p1099_p11, %p1095_p8 }
 0x54c   : > { %1103 = shalt.err (!%p1100_p12)
}
 0x54d   : > { %1020 = dma.vmem_to_hbm [thread:$0]  (%p1268_p5), %s826_s26, 128, %s823_s25, %s799_s10   ;;  %vm791_vm0 = vcmask 64512  }
 0x54e   : > { %s1426_s12 = sshll.u32 %s1341_s17, 3  ;;  %s1427_s0 = sshll.u32 %s1251_s9, 7 }
 0x54f   : > { %s300_s13 = scalar_lea.vmem [#allocation2], %s1426_s12  ;;  %s1375_s24 = scalar_lea.hbm %s1418_s7, %s1427_s0 }
 0x550   : > { %s812_s23 = sshll.u32 %s300_s13, 4  ;;  %s794_s19 = scalar_lea.sflag [#allocation3], %s1341_s17  ;;  %s813_s23 = int_to_ptr.vmem [resolvable:$true] %s812_s23 }
 0x551   : > { %s1104_s21 = scalar_lea.vmem %s813_s23, 128  ;;  %s1184_s25 = smov [#allocation2]  }
 0x552   : > { %p1105_p13 = scmp.ne.s32.totalorder %s813_s23, %s1104_s21  ;;  %s1108_s26 = sshll.u32 %s1184_s25, 4  ;;  %s1109_s26 = int_to_ptr.vmem [resolvable:$false] %s1108_s26 }
 0x553   : > { %s1110_s10 = scalar_lea.vmem %s1109_s26, 256  ;;  %p1111_p2 = scmp.lt.s32.totalorder %s813_s23, %s1109_s26 }
 0x554   : > { %p1106_p0 = pnand %p1105_p13, %p1268_p5  ;;  %p1112_p3 = scmp.lt.s32.totalorder %s1110_s10, %s1104_s21 }
 0x556   : > { %p1107_p1 = pneg %p1106_p0  ;;  %p1113_p4 = por %p1112_p3, %p1111_p2 }
 0x558   : > { %p1114_p7 = pnand %p1113_p4, %p1107_p1 }
 0x5fd   : > { %v716_v54 = vpop.f32.mrf.mxu1 }
 0x5ff   : > { %v1011_v55 = vpop.f32.mrf.mxu1 }
 0x601   : > { %v786_v56 = vpop.f32.mrf.mxu1 }
 0x602   : > { %v790_v57 = vmax.f32 %v716_v54, %v786_v56 }
 0x603   : > { %v1018_v58 = vpop.f32.mrf.mxu1 }
 0x604   : > { %792 = vst.msk [vmem:[%s300_s13] sm:$0xff] %vm791_vm0, %v790_v57 }
 0x605   : > { %1117 = shalt.err (!%p1114_p7)
}
 0x606   : > { %s1118_s9 = scalar_lea.hbm %s1375_s24, 128  ;;  %s1122_s12 = scalar_lea.hbm %s1418_s7, 256 }
 0x607   : > { %p1119_p8 = scmp.ne.s32.totalorder %s1375_s24, %s1118_s9  ;;  %p1123_p11 = scmp.lt.s32.totalorder %s1375_s24, %s1418_s7 }
 0x608   : > { %p1124_p12 = scmp.lt.s32.totalorder %s1122_s12, %s1118_s9 }
 0x609   : > { %p1120_p9 = pnand %p1119_p8, %p1268_p5 }
 0x60a   : > { %p1125_p13 = por %p1124_p12, %p1123_p11 }
 0x60b   : > { %p1121_p10 = pneg %p1120_p9 }
 0x60d   : > { %p1126_p0 = pnand %p1125_p13, %p1121_p10 }
 0x60f   : > { %1129 = shalt.err (!%p1126_p0)
}
 0x610   : > { %1019 = dma.vmem_to_hbm [thread:$0]  (%p1268_p5), %s813_s23, 128, %s1375_s24, %s794_s19  }
 0x611 PF: > { %p1030_p1 = scmp.ge.s32.totalorder %s1168_s30, 2  ;;  %s837_s18 = sand.u32 1, %s1156_s27  }
 0x612   : > { %s838_s20 = scalar_lea.sflag [#allocation3], %s837_s18 }
 0x613   : > { %p1024_p2 = pnand %p1030_p1, %p1272_p6 }
 0x615   : > { %p1025_p3 = pneg %p1024_p2 }
 0x617   : > { %1147 = dma.done.wait (%p1025_p3), %s838_s20, 128  }
 0x618   : > { %1149 = vsyncadd (%p1025_p3), %s838_s20, 4294967168  ;;  %s847_s21 = scalar_lea.sflag [#allocation5], %s837_s18 }
 0x619   : > { %1151 = dma.done.wait (%p1025_p3), %s847_s21, 128  }
 0x61a   : > { %1153 = vsyncadd (%p1025_p3), %s847_s21, 4294967168  ;;  %p22_p5 = scmp.ge.s32.totalorder %s1255_s11, 4   ;;  %s1428_s27 = smov %s1160_s28 }
 0x61b   : > { %s1429_s28 = smov %s1164_s29  ;;  %s1430_s29 = smov %s1266_s14 }
 0x61c   : > { %s1431_s30 = smov %s1255_s11  ;;  %24 = sbr.rel (!%p22_p5) target bundleno = 7 (0x7), region = 100 }
 0x621   :  { %852 = vsyncpa [#allocation3], 1 }
 0x622   :  { %854 = vsyncpa [#allocation3 + $0x1], 1 }
 0x623   :  { %855 = vsyncpa [#allocation5], 1 }
 0x624   :  { %857 = vsyncpa [#allocation5 + $0x1], 1 }

</bundles_post_ra>
